<compile_context>
chip_gen: v7x
topology: tpu7x:2x2x1
jax: 0.10.0
libtpu: 0.0.40
codegen_flags: <defaults>
</compile_context>

<pallas_src>
import jax
import jax.numpy as jnp
from jax import lax
from jax.experimental import pallas as pl
from jax.experimental.pallas import tpu as pltpu


def _make_conv_tanh_kernel(B, H, W, C_in, C_out):
    """Kernel closure with static batch-per-step / spatial / channel sizes."""
    HW = H * W
    PAD = W + 1            # flat pad covering one row above/below plus one column
    del C_out  # shape comes from the refs

    def kernel(x_ref, w_ref, o_ref):
        # x_ref : (B, C_in, HW)   images of this grid step, HW on lanes (f32)
        # w_ref : (C_out, 9*C_in) flattened conv weight, (ky, kx, c) ordering (bf16)
        # o_ref : (B, C_out, HW)  lane-dense output block (f32)

        # Hoisted column masks (JAX does not CSE iota/broadcast -> build once).
        w_col = lax.broadcasted_iota(jnp.int32, (1, HW), 1) % W
        mask_left = w_col >= 1           # kx == 0 (dx = -1) invalid at w == 0
        mask_right = w_col <= W - 2      # kx == 2 (dx = +1) invalid at w == W-1

        zero_pad = jnp.zeros((C_in, PAD), jnp.bfloat16)
        zero_lane = jnp.zeros((), jnp.bfloat16)

        # Build the (9*C_in, B*HW) im2col matrix entirely in registers/values.
        cols = []
        for b in range(B):                                   # static unroll
            xb = x_ref[b].astype(jnp.bfloat16)               # (C_in, HW)
            # In-kernel zero padding: [PAD zeros | image | PAD zeros].
            xpad = jnp.concatenate([zero_pad, xb, zero_pad], axis=1)   # (C_in, L)
            taps = []
            for ky in range(3):
                for kx in range(3):
                    start = ky * W + kx                      # static lane offset
                    t = lax.slice(xpad, (0, start), (C_in, start + HW))  # (C_in, HW)
                    if kx == 0:
                        t = jnp.where(mask_left, t, zero_lane)
                    elif kx == 2:
                        t = jnp.where(mask_right, t, zero_lane)
                    taps.append(t)
            cols.append(jnp.concatenate(taps, axis=0))       # (9*C_in, HW)
        patches = jnp.concatenate(cols, axis=1)              # (9*C_in, B*HW) bf16

        # Single MXU matmul per grid step: K = 9*C_in, N = B*HW, f32 accumulate.
        y = jnp.dot(w_ref[...], patches, preferred_element_type=jnp.float32)
        y = jnp.tanh(y)                                      # (C_out, B*HW)

        # Lane-dense stores: per-image slices start at multiples of HW (>=128).
        for b in range(B):
            o_ref[b] = y[:, b * HW:(b + 1) * HW].astype(o_ref.dtype)

    return kernel


def _choose_batching(N, max_images_per_step=8):
    """Pick images-per-step B and grid length (N // B)."""
    # Largest divisor of N that is <= max_images_per_step (keeps the static
    # in-kernel unroll and register pressure bounded).
    B = 1
    for cand in range(min(N, max_images_per_step), 0, -1):
        if N % cand == 0:
            B = cand
            break
    steps = N // B

    # v7x has 2 TensorCores sharded via "parallel" grid axes: keep at least a
    # 2-way grid there.  On v5e/v6e (1 TC) a single bigger step is best.
    try:
        kind = jax.devices()[0].device_kind.lower()
    except Exception:
        kind = ""
    if "v7" in kind and steps == 1 and N >= 2 and N % 2 == 0:
        B, steps = N // 2, 2
    return B, steps


def generator_output_forward(x_nchw, weight_oihw):
    """Forward pass of the Generator's final conv3x3 + tanh head.

    x_nchw      : (N, C_in, H, W)      float32
    weight_oihw : (C_out, C_in, 3, 3)  float32 (PyTorch Conv2d layout)
    returns     : (N, C_out, H, W)     float32
    """
    N, C_in, H, W = x_nchw.shape
    C_out = weight_oihw.shape[0]
    HW = H * W

    B, steps = _choose_batching(N)

    # Free (contiguous) reshape, no HBM transpose pass: NCHW -> NC(HW).
    x_flat = x_nchw.reshape(N, C_in, HW)
    # Tiny weight re-layout + one-time bf16 cast for the MXU:
    # (O, I, kh, kw) -> (O, kh, kw, I) -> (O, 9*I), matching the in-kernel
    # (ky, kx, c) patch-row ordering.
    w_flat = (
        jnp.transpose(weight_oihw, (0, 2, 3, 1))
        .reshape(C_out, 9 * C_in)
        .astype(jnp.bfloat16)
    )

    kernel = _make_conv_tanh_kernel(B, H, W, C_in, C_out)

    out_flat = pl.pallas_call(
        kernel,
        out_shape=jax.ShapeDtypeStruct((N, C_out, HW), x_nchw.dtype),
        grid_spec=pltpu.PrefetchScalarGridSpec(
            num_scalar_prefetch=0,
            grid=(steps,),
            in_specs=[
                pl.BlockSpec((B, C_in, HW), lambda g: (g, 0, 0)),
                pl.BlockSpec((C_out, 9 * C_in), lambda g: (0, 0)),
            ],
            out_specs=pl.BlockSpec((B, C_out, HW), lambda g: (g, 0, 0)),
        ),
        compiler_params=pltpu.CompilerParams(
            dimension_semantics=("parallel",),
        ),
    )(x_flat, w_flat)

    # Free reshape back: NC(HW) -> NCHW (the PyTorch output convention).
    return out_flat.reshape(N, C_out, H, W)


def _reference_forward(x_nchw, weight_oihw):
    """Pure-JAX f32 reference (XLA conv, NCHW/OIHW) for numerical check."""
    y = jax.lax.conv_general_dilated(
        x_nchw, weight_oihw,
        window_strides=(1, 1),
        padding=((1, 1), (1, 1)),
        dimension_numbers=("NCHW", "OIHW", "NCHW"),
    )
    return jnp.tanh(y)


if __name__ == "__main__":
    key = jax.random.PRNGKey(0)
    k_x, k_w = jax.random.split(key)

    # Small shapes consistent with the module's output head: batch=2, C_in=4, 16x16.
    N, C_in, H, W = 2, 4, 16, 16
    C_out = 3

    x = jax.random.normal(k_x, (N, C_in, H, W), dtype=jnp.float32)
    # Deterministic conv weight (roughly Kaiming-scale), PyTorch OIHW layout.
    fan_in = C_in * 3 * 3
    weight = jax.random.normal(k_w, (C_out, C_in, 3, 3), dtype=jnp.float32) * (
        1.0 / jnp.sqrt(fan_in)
    )

    y = generator_output_forward(x, weight)
    y = jax.block_until_ready(y)
    assert y.shape == (N, C_out, H, W)

    # Tight check vs a bf16-operand-matched reference (kernel uses bf16 MXU
    # operands with f32 accumulation).
    x_q = x.astype(jnp.bfloat16).astype(jnp.float32)
    w_q = weight.astype(jnp.bfloat16).astype(jnp.float32)
    y_ref_bf16 = _reference_forward(x_q, w_q)
    assert jnp.allclose(y, y_ref_bf16, atol=1e-3, rtol=0), "mismatch vs bf16 reference"

    # Looser semantic check vs the full-f32 reference.
    y_ref = _reference_forward(x, weight)
    assert jnp.allclose(y, y_ref, atol=3e-2, rtol=0), "mismatch vs f32 reference"

    print("KERNEL_OK")
</pallas_src>

<mosaic_0001>
module attributes {stable_mosaic.version = 11 : i64} {
  func.func @kernel(%arg0: i32, %arg1: memref<2x4x256xf32, #tpu.memory_space<vmem>>, %arg2: memref<3x36xbf16, #tpu.memory_space<vmem>>, %arg3: memref<2x3x256xf32, #tpu.memory_space<vmem>>) attributes {dimension_semantics = [#tpu.dimension_semantics<parallel>], iteration_bounds = array<i64: 1>, scalar_prefetch = 0 : i64, scratch_operands = 0 : i64, tpu.core_type = #tpu.core_type<tc>, window_params = [{transform_indices = @transform_0, window_bounds = array<i64: 2, 4, 256>}, {pipeline_mode = #tpu.pipeline_mode<synchronous>, transform_indices = @transform_1, window_bounds = array<i64: 3, 36>}, {transform_indices = @transform_2, window_bounds = array<i64: 2, 3, 256>}]} {
    %0 = tpu.iota {dimensions = array<i32: 1>} : vector<1x256xi32>
    %c16_i32 = arith.constant 16 : i32
    %c0_i32 = arith.constant 0 : i32
    %1 = arith.cmpi eq, %c16_i32, %c0_i32 : i32
    %c1_i32 = arith.constant 1 : i32
    %2 = arith.select %1, %c1_i32, %c16_i32 : i32
    %3 = vector.broadcast %2 : i32 to vector<1x256xi32>
    %4 = arith.remsi %0, %3 : vector<1x256xi32>
    %c0_i32_0 = arith.constant 0 : i32
    %5 = vector.broadcast %c0_i32_0 : i32 to vector<1x256xi32>
    %6 = arith.cmpi ne, %4, %5 : vector<1x256xi32>
    %c0_i32_1 = arith.constant 0 : i32
    %7 = vector.broadcast %c0_i32_1 : i32 to vector<1x256xi32>
    %8 = arith.cmpi slt, %4, %7 : vector<1x256xi32>
    %c0_i32_2 = arith.constant 0 : i32
    %9 = arith.cmpi slt, %2, %c0_i32_2 : i32
    %10 = vector.broadcast %9 : i1 to vector<1x256xi1>
    %11 = vector.broadcast %10 : vector<1x256xi1> to vector<1x256xi1>
    %12 = arith.xori %8, %11 : vector<1x256xi1>
    %13 = arith.andi %12, %6 : vector<1x256xi1>
    %14 = vector.broadcast %2 : i32 to vector<1x256xi32>
    %15 = arith.addi %4, %14 : vector<1x256xi32>
    %16 = arith.select %13, %15, %4 : vector<1x256xi1>, vector<1x256xi32>
    %c1_i32_3 = arith.constant 1 : i32
    %17 = vector.broadcast %c1_i32_3 : i32 to vector<1x256xi32>
    %18 = arith.cmpi sge, %16, %17 : vector<1x256xi32>
    %c14_i32 = arith.constant 14 : i32
    %19 = vector.broadcast %c14_i32 : i32 to vector<1x256xi32>
    %20 = arith.cmpi sle, %16, %19 : vector<1x256xi32>
    %cst = arith.constant 0.000000e+00 : bf16
    %21 = vector.broadcast %cst : bf16 to vector<4x17xbf16>
    %c0 = arith.constant 0 : index
    %c0_4 = arith.constant 0 : index
    %c0_5 = arith.constant 0 : index
    %22 = vector.load %arg1[%c0, %c0_4, %c0_5] : memref<2x4x256xf32, #tpu.memory_space<vmem>>, vector<1x4x256xf32>
    %23 = vector.shape_cast %22 : vector<1x4x256xf32> to vector<4x256xf32>
    %24 = arith.truncf %23 : vector<4x256xf32> to vector<4x256xbf16>
    %25 = tpu.concatenate %21, %24, %21 in 1 : vector<4x17xbf16>, vector<4x256xbf16>, vector<4x17xbf16> -> vector<4x290xbf16>
    %26 = vector.extract_strided_slice %25 {offsets = [0, 0], sizes = [4, 256], strides = [1, 1]} : vector<4x290xbf16> to vector<4x256xbf16>
    %cst_6 = arith.constant 0.000000e+00 : bf16
    %27 = vector.shape_cast %18 : vector<1x256xi1> to vector<1x256xi1>
    %28 = vector.broadcast %27 : vector<1x256xi1> to vector<4x256xi1>
    %29 = vector.broadcast %cst_6 : bf16 to vector<4x256xbf16>
    %30 = arith.select %28, %26, %29 : vector<4x256xi1>, vector<4x256xbf16>
    %31 = vector.extract_strided_slice %25 {offsets = [0, 1], sizes = [4, 256], strides = [1, 1]} : vector<4x290xbf16> to vector<4x256xbf16>
    %32 = vector.extract_strided_slice %25 {offsets = [0, 2], sizes = [4, 256], strides = [1, 1]} : vector<4x290xbf16> to vector<4x256xbf16>
    %cst_7 = arith.constant 0.000000e+00 : bf16
    %33 = vector.shape_cast %20 : vector<1x256xi1> to vector<1x256xi1>
    %34 = vector.broadcast %33 : vector<1x256xi1> to vector<4x256xi1>
    %35 = vector.broadcast %cst_7 : bf16 to vector<4x256xbf16>
    %36 = arith.select %34, %32, %35 : vector<4x256xi1>, vector<4x256xbf16>
    %37 = vector.extract_strided_slice %25 {offsets = [0, 16], sizes = [4, 256], strides = [1, 1]} : vector<4x290xbf16> to vector<4x256xbf16>
    %cst_8 = arith.constant 0.000000e+00 : bf16
    %38 = vector.shape_cast %18 : vector<1x256xi1> to vector<1x256xi1>
    %39 = vector.broadcast %38 : vector<1x256xi1> to vector<4x256xi1>
    %40 = vector.broadcast %cst_8 : bf16 to vector<4x256xbf16>
    %41 = arith.select %39, %37, %40 : vector<4x256xi1>, vector<4x256xbf16>
    %42 = vector.extract_strided_slice %25 {offsets = [0, 17], sizes = [4, 256], strides = [1, 1]} : vector<4x290xbf16> to vector<4x256xbf16>
    %43 = vector.extract_strided_slice %25 {offsets = [0, 18], sizes = [4, 256], strides = [1, 1]} : vector<4x290xbf16> to vector<4x256xbf16>
    %cst_9 = arith.constant 0.000000e+00 : bf16
    %44 = vector.shape_cast %20 : vector<1x256xi1> to vector<1x256xi1>
    %45 = vector.broadcast %44 : vector<1x256xi1> to vector<4x256xi1>
    %46 = vector.broadcast %cst_9 : bf16 to vector<4x256xbf16>
    %47 = arith.select %45, %43, %46 : vector<4x256xi1>, vector<4x256xbf16>
    %48 = vector.extract_strided_slice %25 {offsets = [0, 32], sizes = [4, 256], strides = [1, 1]} : vector<4x290xbf16> to vector<4x256xbf16>
    %cst_10 = arith.constant 0.000000e+00 : bf16
    %49 = vector.shape_cast %18 : vector<1x256xi1> to vector<1x256xi1>
    %50 = vector.broadcast %49 : vector<1x256xi1> to vector<4x256xi1>
    %51 = vector.broadcast %cst_10 : bf16 to vector<4x256xbf16>
    %52 = arith.select %50, %48, %51 : vector<4x256xi1>, vector<4x256xbf16>
    %53 = vector.extract_strided_slice %25 {offsets = [0, 33], sizes = [4, 256], strides = [1, 1]} : vector<4x290xbf16> to vector<4x256xbf16>
    %54 = vector.extract_strided_slice %25 {offsets = [0, 34], sizes = [4, 256], strides = [1, 1]} : vector<4x290xbf16> to vector<4x256xbf16>
    %cst_11 = arith.constant 0.000000e+00 : bf16
    %55 = vector.shape_cast %20 : vector<1x256xi1> to vector<1x256xi1>
    %56 = vector.broadcast %55 : vector<1x256xi1> to vector<4x256xi1>
    %57 = vector.broadcast %cst_11 : bf16 to vector<4x256xbf16>
    %58 = arith.select %56, %54, %57 : vector<4x256xi1>, vector<4x256xbf16>
    %59 = tpu.concatenate %30, %31, %36, %41, %42, %47, %52, %53, %58 in 0 : vector<4x256xbf16>, vector<4x256xbf16>, vector<4x256xbf16>, vector<4x256xbf16>, vector<4x256xbf16>, vector<4x256xbf16>, vector<4x256xbf16>, vector<4x256xbf16>, vector<4x256xbf16> -> vector<36x256xbf16>
    %c1 = arith.constant 1 : index
    %c0_12 = arith.constant 0 : index
    %c0_13 = arith.constant 0 : index
    %60 = vector.load %arg1[%c1, %c0_12, %c0_13] : memref<2x4x256xf32, #tpu.memory_space<vmem>>, vector<1x4x256xf32>
    %61 = vector.shape_cast %60 : vector<1x4x256xf32> to vector<4x256xf32>
    %62 = arith.truncf %61 : vector<4x256xf32> to vector<4x256xbf16>
    %63 = tpu.concatenate %21, %62, %21 in 1 : vector<4x17xbf16>, vector<4x256xbf16>, vector<4x17xbf16> -> vector<4x290xbf16>
    %64 = vector.extract_strided_slice %63 {offsets = [0, 0], sizes = [4, 256], strides = [1, 1]} : vector<4x290xbf16> to vector<4x256xbf16>
    %cst_14 = arith.constant 0.000000e+00 : bf16
    %65 = vector.shape_cast %18 : vector<1x256xi1> to vector<1x256xi1>
    %66 = vector.broadcast %65 : vector<1x256xi1> to vector<4x256xi1>
    %67 = vector.broadcast %cst_14 : bf16 to vector<4x256xbf16>
    %68 = arith.select %66, %64, %67 : vector<4x256xi1>, vector<4x256xbf16>
    %69 = vector.extract_strided_slice %63 {offsets = [0, 1], sizes = [4, 256], strides = [1, 1]} : vector<4x290xbf16> to vector<4x256xbf16>
    %70 = vector.extract_strided_slice %63 {offsets = [0, 2], sizes = [4, 256], strides = [1, 1]} : vector<4x290xbf16> to vector<4x256xbf16>
    %cst_15 = arith.constant 0.000000e+00 : bf16
    %71 = vector.shape_cast %20 : vector<1x256xi1> to vector<1x256xi1>
    %72 = vector.broadcast %71 : vector<1x256xi1> to vector<4x256xi1>
    %73 = vector.broadcast %cst_15 : bf16 to vector<4x256xbf16>
    %74 = arith.select %72, %70, %73 : vector<4x256xi1>, vector<4x256xbf16>
    %75 = vector.extract_strided_slice %63 {offsets = [0, 16], sizes = [4, 256], strides = [1, 1]} : vector<4x290xbf16> to vector<4x256xbf16>
    %cst_16 = arith.constant 0.000000e+00 : bf16
    %76 = vector.shape_cast %18 : vector<1x256xi1> to vector<1x256xi1>
    %77 = vector.broadcast %76 : vector<1x256xi1> to vector<4x256xi1>
    %78 = vector.broadcast %cst_16 : bf16 to vector<4x256xbf16>
    %79 = arith.select %77, %75, %78 : vector<4x256xi1>, vector<4x256xbf16>
    %80 = vector.extract_strided_slice %63 {offsets = [0, 17], sizes = [4, 256], strides = [1, 1]} : vector<4x290xbf16> to vector<4x256xbf16>
    %81 = vector.extract_strided_slice %63 {offsets = [0, 18], sizes = [4, 256], strides = [1, 1]} : vector<4x290xbf16> to vector<4x256xbf16>
    %cst_17 = arith.constant 0.000000e+00 : bf16
    %82 = vector.shape_cast %20 : vector<1x256xi1> to vector<1x256xi1>
    %83 = vector.broadcast %82 : vector<1x256xi1> to vector<4x256xi1>
    %84 = vector.broadcast %cst_17 : bf16 to vector<4x256xbf16>
    %85 = arith.select %83, %81, %84 : vector<4x256xi1>, vector<4x256xbf16>
    %86 = vector.extract_strided_slice %63 {offsets = [0, 32], sizes = [4, 256], strides = [1, 1]} : vector<4x290xbf16> to vector<4x256xbf16>
    %cst_18 = arith.constant 0.000000e+00 : bf16
    %87 = vector.shape_cast %18 : vector<1x256xi1> to vector<1x256xi1>
    %88 = vector.broadcast %87 : vector<1x256xi1> to vector<4x256xi1>
    %89 = vector.broadcast %cst_18 : bf16 to vector<4x256xbf16>
    %90 = arith.select %88, %86, %89 : vector<4x256xi1>, vector<4x256xbf16>
    %91 = vector.extract_strided_slice %63 {offsets = [0, 33], sizes = [4, 256], strides = [1, 1]} : vector<4x290xbf16> to vector<4x256xbf16>
    %92 = vector.extract_strided_slice %63 {offsets = [0, 34], sizes = [4, 256], strides = [1, 1]} : vector<4x290xbf16> to vector<4x256xbf16>
    %cst_19 = arith.constant 0.000000e+00 : bf16
    %93 = vector.shape_cast %20 : vector<1x256xi1> to vector<1x256xi1>
    %94 = vector.broadcast %93 : vector<1x256xi1> to vector<4x256xi1>
    %95 = vector.broadcast %cst_19 : bf16 to vector<4x256xbf16>
    %96 = arith.select %94, %92, %95 : vector<4x256xi1>, vector<4x256xbf16>
    %97 = tpu.concatenate %68, %69, %74, %79, %80, %85, %90, %91, %96 in 0 : vector<4x256xbf16>, vector<4x256xbf16>, vector<4x256xbf16>, vector<4x256xbf16>, vector<4x256xbf16>, vector<4x256xbf16>, vector<4x256xbf16>, vector<4x256xbf16>, vector<4x256xbf16> -> vector<36x256xbf16>
    %98 = tpu.concatenate %59, %97 in 1 : vector<36x256xbf16>, vector<36x256xbf16> -> vector<36x512xbf16>
    %c0_20 = arith.constant 0 : index
    %c0_21 = arith.constant 0 : index
    %99 = vector.load %arg2[%c0_20, %c0_21] : memref<3x36xbf16, #tpu.memory_space<vmem>>, vector<3x36xbf16>
    %cst_22 = arith.constant dense<0.000000e+00> : vector<3x512xf32>
    %100 = tpu.matmul %99, %98, %cst_22 {dimension_numbers = #tpu.dot_dimension_numbers<[1], [0], [0], [1], [0, 0, 1, 1], [], []>} : vector<3x36xbf16>, vector<36x512xbf16>, vector<3x512xf32> -> vector<3x512xf32>
    %101 = math.tanh %100 : vector<3x512xf32>
    %102 = vector.extract_strided_slice %101 {offsets = [0, 0], sizes = [3, 256], strides = [1, 1]} : vector<3x512xf32> to vector<3x256xf32>
    %c0_23 = arith.constant 0 : index
    %c0_24 = arith.constant 0 : index
    %c0_25 = arith.constant 0 : index
    %103 = vector.load %arg3[%c0_23, %c0_24, %c0_25] : memref<2x3x256xf32, #tpu.memory_space<vmem>>, vector<1x3x256xf32>
    %104 = vector.shape_cast %103 : vector<1x3x256xf32> to vector<3x256xf32>
    %105 = vector.shape_cast %102 : vector<3x256xf32> to vector<1x3x256xf32>
    tpu.vector_store %arg3[%c0_23, %c0_24, %c0_25], %105 {strides = array<i32>} : memref<2x3x256xf32, #tpu.memory_space<vmem>>, vector<1x3x256xf32>,
    %106 = vector.extract_strided_slice %101 {offsets = [0, 256], sizes = [3, 256], strides = [1, 1]} : vector<3x512xf32> to vector<3x256xf32>
    %c1_26 = arith.constant 1 : index
    %c0_27 = arith.constant 0 : index
    %c0_28 = arith.constant 0 : index
    %107 = vector.load %arg3[%c1_26, %c0_27, %c0_28] : memref<2x3x256xf32, #tpu.memory_space<vmem>>, vector<1x3x256xf32>
    %108 = vector.shape_cast %107 : vector<1x3x256xf32> to vector<3x256xf32>
    %109 = vector.shape_cast %106 : vector<3x256xf32> to vector<1x3x256xf32>
    tpu.vector_store %arg3[%c1_26, %c0_27, %c0_28], %109 {strides = array<i32>} : memref<2x3x256xf32, #tpu.memory_space<vmem>>, vector<1x3x256xf32>,
    return
  }
  func.func @transform_0(%arg0: i32) -> (i32, i32, i32) {
    %c0_i32 = arith.constant 0 : i32
    %c0_i32_0 = arith.constant 0 : i32
    %c0_i32_1 = arith.constant 0 : i32
    return %arg0, %c0_i32, %c0_i32_0 : i32, i32, i32
  }
  func.func @transform_1(%arg0: i32) -> (i32, i32) {
    %c0_i32 = arith.constant 0 : i32
    %c0_i32_0 = arith.constant 0 : i32
    %c0_i32_1 = arith.constant 0 : i32
    return %c0_i32, %c0_i32_0 : i32, i32
  }
  func.func @transform_2(%arg0: i32) -> (i32, i32, i32) {
    %c0_i32 = arith.constant 0 : i32
    %c0_i32_0 = arith.constant 0 : i32
    %c0_i32_1 = arith.constant 0 : i32
    return %arg0, %c0_i32, %c0_i32_0 : i32, i32, i32
  }
}

</mosaic_0001>

<bundles_post_ra>
// kernel: tpu_custom_call.1
= control target key start
LH: loop header
LB: loop body
LE: loop exit
PB: predicated region body
PF: predicated region fallthrough
CT: control target
= control target key end

     0   :  { %7 = vsyncpa [#allocation3], 0  ;;  %s661_s9 = smov [#allocation2]   ;;  %s1006_s0 = inlined_call_operand.hbm [shape: f32[2,4,256], index: 0, kind: input, shape index: {}]   ;;  %s1007_s1 = inlined_call_operand.vmem [shape: bf16[3,36], index: 1, kind: input, shape index: {}]   ;;  %s1008_s2 = inlined_call_operand.vmem [shape: f32[2,3,256], index: 2, kind: output, shape index: {}]  }
   0x1   :  { %s13_s10 = sshll.u32 %s661_s9, 4  ;;  %s637_s13 = scalar_lea.hbm %s1006_s0, 256  ;;  %s14_s10 = int_to_ptr.vmem [resolvable:$true] %s13_s10 }
   0x2   :  { %p638_p0 = scmp.ne.s32.totalorder %s1006_s0, %s637_s13  ;;  %p641_p1 = scmp.lt.u32.totalorder %s637_s13, %s1006_s0 }
   0x4   :  { %p643_p2 = pnand %p641_p1, %p638_p0 }
   0x6   :  { %646 = shalt.err (!%p643_p2)
}
   0x7   :  { %s647_s18 = scalar_lea.vmem %s14_s10, 256  ;;  %p652_p4 = scmp.lt.s32.totalorder %s14_s10, %s14_s10 }
   0x8   :  { %p648_p3 = scmp.ne.s32.totalorder %s14_s10, %s647_s18  ;;  %p653_p5 = scmp.lt.s32.totalorder %s647_s18, %s647_s18 }
   0xa   :  { %p654_p6 = por %p653_p5, %p652_p4 }
   0xc   :  { %p655_p7 = pnand %p654_p6, %p648_p3 }
   0xe   :  { %658 = shalt.err (!%p655_p7)
}
   0xf   :  { %s662_s19 = smov 128   ;;  %s663_s20 = smov 8  }
  0x10   :  { %19 = dma.hbm_to_vmem [thread:$0]  %s1006_s0, 256, %s14_s10, [#allocation3], %s662_s19, %s662_s19, %s663_s20  }
  0x11   :  { %659 = dma.done.wait [#allocation3], 256  }
  0x12   :  { %660 = vsyncadd [#allocation3], 4294967040  ;;  %v28_v0 = vlaneseq  ;;  %v664_v1 = vmov 0   ;;  %v317_v7 = vld [vmem:[#allocation2 + $0x8] sm:$0xff]  ;;  %v59_v8 = vld [vmem:[#allocation2] sm:$0xff]  ;;  %s665_s0 = smov 17  }
  0x13   :  { %534 = vmatprep.mubr.bf16.mxu0 %v664_v1  ;;  %575 = vmatprep.mubr.bf16.mxu1 %v664_v1  ;;  %v321_v10 = vpack.c.bf16 %v317_v7, %v317_v7  ;;  %v63_v11 = vpack.c.bf16 %v59_v8, %v59_v8  ;;  %v61_v12 = vcombine.high %v59_v8, %v59_v8  ;;  %s666_s23 = smov 2   ;;  %s667_s24 = smov 16   ;;  %vm71_vm6 = vcmask 138240  }
  0x14   :  { %v29_v2 = vand.u32 127, %v28_v0  ;;  %v89_v5 = vshrl.u32 %v28_v0, 7  ;;  %v319_v16 = vcombine.high %v317_v7, %v317_v7  ;;  %s668_s25 = smov 18   ;;  %s669_s26 = smov 32   ;;  %vm118_vm15 = vcmask 15360  }
  0x15   :  { %325 = vrot.lane.b32.xlu0 %v321_v10, %s665_s0  ;;  %67 = vrot.lane.b32.xlu1 %v63_v11, %s665_s0  ;;  %v64_v17 = vpack.c.bf16 %v61_v12, %v61_v12  ;;  %s670_s27 = smov 34   ;;  %s671_s28 = smov 111  }
  0x16   :  { %v30_v3 = vadd.s32 128, %v29_v2  ;;  %v35_v4 = vand.u32 15, %v29_v2  ;;  %v90_v13 = vsub.s32 0, %v89_v5  ;;  %v94_v18 = vsub.s32 4, %v89_v5  ;;  %s672_s29 = smov 127   ;;  %s673_s30 = smov 95  }
  0x17   :  { %v322_v22 = vpack.c.bf16 %v319_v16, %v319_v16  ;;  %s674_s3 = smov 126   ;;  %s675_s4 = smov 94  }
  0x18   :  { %v42_v6 = vand.u32 15, %v30_v3  ;;  %vm706_vm0 = vcmp.le.s32.totalorder %v35_v4, 14  ;;  %vm710_vm2 = vcmp.ge.s32.totalorder %v35_v4, 1  ;;  %s676_s5 = smov 112   ;;  %s677_s6 = smov 110  }
  0x19   :  { %69 = vrot.lane.b32.xlu1 %v64_v17, %s665_s0  ;;  %s678_s7 = smov 96  }
  0x1a   :  { %vm58_vm1 = vcmp.le.s32.totalorder %v42_v6, 14  ;;  %vm714_vm3 = vcmp.ge.s32.totalorder %v42_v6, 1 }
  0x1b   :  { %vm104_vm4 = vmpackc.low %vm58_vm1, %vm706_vm0 }
  0x1c   :  { %v105_v19 = vsel %vm104_vm4, 65537, %v664_v1  ;;  %vm86_vm5 = vmpackc.low %vm714_vm3, %vm710_vm2  ;;  %vm130_vm2 = vcmask 130048  }
  0x1d   :  { %v109_v20 = vrot.slane %v105_v19, %v90_v13  ;;  %v113_v21 = vrot.slane %v105_v19, %v94_v18  ;;  %v87_v23 = vsel %vm86_vm5, 65537, %v664_v1  ;;  %327 = vrot.lane.b32.xlu1 %v322_v22, %s665_s0  ;;  %vm142_vm5 = vcmask 146432  }
  0x1e   :  { %v91_v24 = vrot.slane %v87_v23, %v90_v13  ;;  %v95_v25 = vrot.slane %v87_v23, %v94_v18 }
  0x1f   :  { %114 = vrot.lane.b32.xlu0 %v109_v20, %s666_s23 }
  0x20   :  { %vm96_vm7 = vcmp.ne.s16.totalorder %v91_v24, 0  ;;  %vm97_vm8 = vcmp.ne.s16.totalorder %v95_v25, 0 }
  0x21   :  { %128 = vrot.lane.b32.xlu1 %v95_v25, %s667_s24 }
  0x23   :  { %116 = vrot.lane.b32.xlu0 %v113_v21, %s666_s23 }
  0x25   :  { %140 = vrot.lane.b32.xlu1 %v113_v21, %s668_s25 }
  0x27   :  { %126 = vrot.lane.b32.xlu0 %v91_v24, %s667_s24 }
  0x29   :  { %152 = vrot.lane.b32.xlu1 %v95_v25, %s669_s26 }
  0x2b   :  { %138 = vrot.lane.b32.xlu0 %v109_v20, %s668_s25 }
  0x2d   :  { %164 = vrot.lane.b32.xlu1 %v113_v21, %s670_s27 }
  0x2f   :  { %150 = vrot.lane.b32.xlu0 %v91_v24, %s669_s26 }
  0x33   :  { %162 = vrot.lane.b32.xlu0 %v109_v20, %s670_s27 }
  0x87   :  { %v326_v26 = vpop.permute.xlu0 %325  ;;  %v68_v27 = vpop.permute.xlu1 %67 }
  0x88   :  { %v725_v28 = vsel %vm71_vm6, 0, %v326_v26  ;;  %v728_v29 = vsel %vm71_vm6, 0, %v68_v27 }
  0x89   :  { %218 = vrot.lane.b32.xlu0 %v728_v29, %s671_s28  ;;  %v356_v30 = vrot.slane %v725_v28, 6  ;;  %v733_v31 = vsel %vm96_vm7, %v728_v29, 0  ;;  %v736_v32 = vsel %vm96_vm7, %v725_v28, 0  ;;  %v176_v38 = vrot.slane %v728_v29, 6 }
  0x8a   :  { %v431_v42 = vrot.slane %v725_v28, 2  ;;  %v257_v46 = vrot.slane %v728_v29, 2 }
  0x8b   :  { %359 = vrot.lane.b32.xlu1 %v356_v30, %s672_s29  ;;  %v70_v33 = vpop.permute.xlu1 %69 }
  0x8c   :  { %v742_v35 = vsel %vm71_vm6, %v68_v27, %v70_v33  ;;  %v745_v36 = vsel %vm71_vm6, %v70_v33, 0 }
  0x8d   :  { %395 = vrot.lane.b32.xlu0 %v725_v28, %s671_s28  ;;  %v752_v39 = vsel %vm97_vm8, %v742_v35, 0  ;;  %v178_v45 = vrot.slane %v745_v36, 6  ;;  %v177_v49 = vrot.slane %v742_v35, 6  ;;  %v258_v50 = vrot.slane %v742_v35, 2 }
  0x8e   :  { %v259_v56 = vrot.slane %v745_v36, 2 }
  0x8f   :  { %222 = vrot.lane.b32.xlu1 %v745_v36, %s671_s28  ;;  %v328_v37 = vpop.permute.xlu1 %327 }
  0x90   :  { %v755_v40 = vsel %vm71_vm6, %v328_v37, 0  ;;  %v765_v43 = vsel %vm71_vm6, %v326_v26, %v328_v37 }
  0x91   :  { %v739_v34 = vpop.permute.xlu0 %114  ;;  %179 = vrot.lane.b32.xlu0 %v176_v38, %s672_s29  ;;  %v358_v47 = vrot.slane %v755_v40, 6  ;;  %v357_v51 = vrot.slane %v765_v43, 6  ;;  %v785_v52 = vsel %vm97_vm8, %v765_v43, 0  ;;  %v433_v54 = vrot.slane %v755_v40, 2 }
  0x92   :  { %vm120_vm10 = vcmp.ne.s16.totalorder %v739_v34, 0  ;;  %v432_v61 = vrot.slane %v765_v43, 2  ;;  %vm154_vm8 = vcmask 261120  }
  0x93   :  { %399 = vrot.lane.b32.xlu1 %v755_v40, %s671_s28  ;;  %v129_v57 = vpop.permute.xlu1 %128  ;;  %v339_v59 = vsel %vm120_vm10, %v725_v28, 0  ;;  %v123_v6 = vsel %vm120_vm10, %v728_v29, 0  ;;  %vm166_vm10 = vcmask 277504  }
  0x94   :  { %vm134_vm11 = vcmp.ne.s16.totalorder %v129_v57, 0  ;;  %v370_v62 = vrot.slane %v339_v59, 4  ;;  %v191_v9 = vrot.slane %v123_v6, 4 }
  0x95   :  { %v758_v41 = vpop.permute.xlu0 %116  ;;  %220 = vrot.lane.b32.xlu0 %v742_v35, %s671_s28  ;;  %v344_v63 = vsel %vm134_vm11, %v755_v40, 0  ;;  %v137_v10 = vsel %vm134_vm11, %v745_v36, 0 }
  0x96   :  { %vm122_vm9 = vcmp.ne.s16.totalorder %v758_v41, 0  ;;  %v386_v3 = vrot.slane %v344_v63, 2  ;;  %v208_v13 = vrot.slane %v137_v10, 2  ;;  %v119_v17 = vsel %vm118_vm15, %v739_v34, %v758_v41 }
  0x97   :  { %434 = vrot.lane.b32.xlu1 %v431_v42, %s673_s30  ;;  %v341_v55 = vsel %vm122_vm9, %v755_v40, 0  ;;  %v125_v0 = vsel %vm122_vm9, %v745_v36, 0  ;;  %v141_v1 = vpop.permute.xlu1 %140  ;;  %vm121_vm4 = vcmp.ne.s16.totalorder %v119_v17, 0  ;;  %vm281_vm15 = vcmask 1041408  }
  0x98   :  { %v372_v58 = vrot.slane %v341_v55, 4  ;;  %v193_v5 = vrot.slane %v125_v0, 4  ;;  %vm146_vm14 = vcmp.ne.s16.totalorder %v141_v1, 0  ;;  %v340_v25 = vsel %vm121_vm4, %v765_v43, 0 }
  0x99   :  { %v767_v44 = vpop.permute.xlu0 %126  ;;  %397 = vrot.lane.b32.xlu0 %v765_v43, %s671_s28  ;;  %v149_v8 = vsel %vm146_vm14, %v745_v36, 0  ;;  %v347_v12 = vsel %vm146_vm14, %v755_v40, 0  ;;  %v371_v30 = vrot.slane %v340_v25, 4  ;;  %vm224_vm14 = vcmask 908288  }
  0x9a   :  { %vm132_vm13 = vcmp.ne.s16.totalorder %v767_v44, 0  ;;  %v232_v11 = vrot.slane %v149_v8, 6  ;;  %v408_v16 = vrot.slane %v347_v12, 6  ;;  %v131_v22 = vsel %vm130_vm2, %v767_v44, %v129_v57 }
  0x9b   :  { %183 = vrot.lane.b32.xlu1 %v178_v45, %s672_s29  ;;  %v342_v4 = vsel %vm132_vm13, %v725_v28, 0  ;;  %v135_v14 = vsel %vm132_vm13, %v728_v29, 0  ;;  %v153_v15 = vpop.permute.xlu1 %152  ;;  %vm133_vm6 = vcmp.ne.s16.totalorder %v131_v22, 0  ;;  %vm288_vm2 = vcmask 1043456  }
  0x9c   :  { %v384_v7 = vrot.slane %v342_v4, 2  ;;  %v206_v19 = vrot.slane %v135_v14, 2  ;;  %vm158_vm3 = vcmp.ne.s16.totalorder %v153_v15, 0  ;;  %v343_v33 = vsel %vm133_vm6, %v765_v43, 0 }
  0x9d   :  { %260 = vrot.lane.b32.xlu0 %v257_v46, %s673_s30  ;;  %v775_v48 = vpop.permute.xlu0 %138  ;;  %v161_v23 = vsel %vm158_vm3, %v745_v36, 0  ;;  %v350_v37 = vsel %vm158_vm3, %v755_v40, 0  ;;  %v385_v38 = vrot.slane %v343_v33, 2  ;;  %v136_v55 = vsel %vm133_vm6, %v742_v35, 0 }
  0x9e   :  { %vm144_vm0 = vcmp.ne.s16.totalorder %v775_v48, 0  ;;  %v247_v26 = vrot.slane %v161_v23, 4  ;;  %v422_v42 = vrot.slane %v350_v37, 4  ;;  %v207_v59 = vrot.slane %v136_v55, 2 }
  0x9f   :  { %363 = vrot.lane.b32.xlu1 %v358_v47, %s672_s29  ;;  %v147_v18 = vsel %vm144_vm0, %v728_v29, 0  ;;  %v345_v27 = vsel %vm144_vm0, %v725_v28, 0  ;;  %vm200_vm0 = vcmask 1031168   ;;  %vm293_vm3 = vcmask 1045504  }
  0xa0   :  { %v230_v21 = vrot.slane %v147_v18, 6  ;;  %v406_v34 = vrot.slane %v345_v27, 6  ;;  %vm254_vm6 = vcmask 785408  }
  0xa1   :  { %181 = vrot.lane.b32.xlu0 %v177_v49, %s672_s29  ;;  %v787_v53 = vpop.permute.xlu0 %150  ;;  %v124_v49 = vsel %vm121_vm4, %v742_v35, 0  ;;  %vm239_vm4 = vcmask 900096  }
  0xa2   :  { %vm156_vm1 = vcmp.ne.s16.totalorder %v787_v53, 0  ;;  %v155_v45 = vsel %vm154_vm8, %v787_v53, %v153_v15  ;;  %v165_v53 = vpop.permute.xlu1 %164  ;;  %vm486_vm8 = vcmask 293888  }
  0xa3   :  { %262 = vrot.lane.b32.xlu1 %v258_v50, %s673_s30  ;;  %v159_v20 = vsel %vm156_vm1, %v728_v29, 0  ;;  %v348_v44 = vsel %vm156_vm1, %v725_v28, 0  ;;  %vm157_vm9 = vcmp.ne.s16.totalorder %v155_v45, 0  ;;  %vm170_vm13 = vcmp.ne.s16.totalorder %v165_v53, 0 }
  0xa4   :  { %v245_v24 = vrot.slane %v159_v20, 4  ;;  %v349_v57 = vsel %vm157_vm9, %v765_v43, 0  ;;  %v173_v63 = vsel %vm170_vm13, %v745_v36, 0  ;;  %vm215_vm1 = vcmask 916480  }
  0xa5   :  { %361 = vrot.lane.b32.xlu0 %v357_v51, %s672_s29  ;;  %v802_v60 = vpop.permute.xlu0 %162  ;;  %v160_v51 = vsel %vm157_vm9, %v742_v35, 0 }
  0xa6   :  { %vm168_vm12 = vcmp.ne.s16.totalorder %v802_v60, 0 }
  0xa7   :  { %438 = vrot.lane.b32.xlu1 %v433_v54, %s673_s30  ;;  %v171_v2 = vsel %vm168_vm12, %v728_v29, 0  ;;  %v143_v29 = vsel %vm142_vm5, %v775_v48, %v141_v1  ;;  %v420_v48 = vrot.slane %v348_v44, 4  ;;  %v192_v54 = vrot.slane %v124_v49, 4 }
  0xa8   :  { %vm145_vm7 = vcmp.ne.s16.totalorder %v143_v29, 0  ;;  %v351_v0 = vsel %vm168_vm12, %v725_v28, 0  ;;  %vm185_vm12 = vcmask 1039360   ;;  %vm266_vm5 = vcmask 777216  }
  0xa9   :  { %264 = vrot.lane.b32.xlu0 %v259_v56, %s673_s30  ;;  %v148_v41 = vsel %vm145_vm7, %v742_v35, 0  ;;  %v346_v47 = vsel %vm145_vm7, %v765_v43, 0  ;;  %v246_v56 = vrot.slane %v160_v51, 4  ;;  %vm278_vm7 = vcmask 769024  }
  0xaa   :  { %v231_v46 = vrot.slane %v148_v41, 6  ;;  %v407_v50 = vrot.slane %v346_v47, 6 }
  0xab   :  { %377 = vrot.lane.b32.xlu1 %v372_v58, %s674_s3  ;;  %v167_v58 = vsel %vm166_vm10, %v802_v60, %v165_v53 }
  0xac   :  { %vm169_vm11 = vcmp.ne.s16.totalorder %v167_v58, 0 }
  0xad   :  { %436 = vrot.lane.b32.xlu0 %v432_v61, %s673_s30  ;;  %v421_v61 = vrot.slane %v349_v57, 4  ;;  %v352_v1 = vsel %vm169_vm11, %v765_v43, 0 }
  0xaf   :  { %373 = vrot.lane.b32.xlu1 %v370_v62, %s674_s3  ;;  %v172_v62 = vsel %vm169_vm11, %v742_v35, 0 }
  0xb1   :  { %272 = vrot.lane.b32.xlu0 %v171_v2, %s675_s4  ;;  %v353_v2 = vsel %vm170_vm13, %v755_v40, 0 }
  0xb3   :  { %391 = vrot.lane.b32.xlu1 %v386_v3, %s676_s5 }
  0xb5   :  { %198 = vrot.lane.b32.xlu0 %v193_v5, %s674_s3 }
  0xb7   :  { %387 = vrot.lane.b32.xlu1 %v384_v7, %s676_s5 }
  0xb9   :  { %194 = vrot.lane.b32.xlu0 %v191_v9, %s674_s3 }
  0xbb   :  { %237 = vrot.lane.b32.xlu1 %v232_v11, %s677_s6 }
  0xbd   :  { %213 = vrot.lane.b32.xlu0 %v208_v13, %s676_s5 }
  0xbf   :  { %413 = vrot.lane.b32.xlu1 %v408_v16, %s677_s6 }
  0xc1   :  { %209 = vrot.lane.b32.xlu0 %v206_v19, %s676_s5 }
  0xc3   :  { %233 = vrot.lane.b32.xlu1 %v230_v21, %s677_s6 }
  0xc5   :  { %248 = vrot.lane.b32.xlu0 %v245_v24, %s678_s7 }
  0xc7   :  { %252 = vrot.lane.b32.xlu1 %v247_v26, %s678_s7 }
  0xc9   :  { %375 = vrot.lane.b32.xlu0 %v371_v30, %s674_s3 }
  0xcb   :  { %409 = vrot.lane.b32.xlu1 %v406_v34, %s677_s6 }
  0xcd   :  { %389 = vrot.lane.b32.xlu0 %v385_v38, %s676_s5 }
  0xcf   :  { %427 = vrot.lane.b32.xlu1 %v422_v42, %s678_s7 }
  0xd1   :  { %235 = vrot.lane.b32.xlu0 %v231_v46, %s677_s6 }
  0xd3   :  { %423 = vrot.lane.b32.xlu1 %v420_v48, %s678_s7 }
  0xd5   :  { %411 = vrot.lane.b32.xlu0 %v407_v50, %s677_s6 }
  0xd7   :  { %196 = vrot.lane.b32.xlu1 %v192_v54, %s674_s3 }
  0xd9   :  { %250 = vrot.lane.b32.xlu0 %v246_v56, %s678_s7 }
  0xdb   :  { %211 = vrot.lane.b32.xlu1 %v207_v59, %s676_s5 }
  0xdd   :  { %425 = vrot.lane.b32.xlu0 %v421_v61, %s678_s7 }
  0xdf   :  { %274 = vrot.lane.b32.xlu1 %v172_v62, %s675_s4 }
  0xe1   :  { %276 = vrot.lane.b32.xlu0 %v173_v63, %s675_s4 }
  0xe3   :  { %445 = vrot.lane.b32.xlu1 %v351_v0, %s675_s4 }
  0xe5   :  { %447 = vrot.lane.b32.xlu0 %v352_v1, %s675_s4 }
  0xe7   :  { %449 = vrot.lane.b32.xlu1 %v353_v2, %s675_s4 }
  0xfb   :  { %v219_v35 = vpop.permute.xlu0 %218 }
  0xfd   :  { %v360_v3 = vpop.permute.xlu1 %359 }
  0xff   :  { %v396_v4 = vpop.permute.xlu0 %395 }
 0x101   :  { %v223_v36 = vpop.permute.xlu1 %222 }
 0x103   :  { %v180_v5 = vpop.permute.xlu0 %179 }
 0x105   :  { %v400_v6 = vpop.permute.xlu1 %399 }
 0x107   :  { %v221_v7 = vpop.permute.xlu0 %220 }
 0x108   :  { %v902_v60 = vsel %vm224_vm14, %v219_v35, %v221_v7  ;;  %v904_v28 = vsel %vm224_vm14, %v221_v7, %v223_v36 }
 0x109   :  { %v906_v8 = vpop.permute.xlu1 %434 }
 0x10b   :  { %v398_v43 = vpop.permute.xlu0 %397 }
 0x10c   :  { %v908_v9 = vsel %vm224_vm14, %v396_v4, %v398_v43  ;;  %v910_v40 = vsel %vm224_vm14, %v398_v43, %v400_v6 }
 0x10d   :  { %v184_v10 = vpop.permute.xlu1 %183 }
 0x10f   :  { %v261_v11 = vpop.permute.xlu0 %260 }
 0x111   :  { %v364_v12 = vpop.permute.xlu1 %363 }
 0x113   :  { %v182_v13 = vpop.permute.xlu0 %181 }
 0x114   :  { %v186_v14 = vsel %vm185_vm12, %v180_v5, %v182_v13  ;;  %v187_v61 = vsel %vm185_vm12, %v182_v13, %v184_v10 }
 0x115   :  { %v915_v15 = vsel %vm281_vm15, %v733_v31, %v186_v14  ;;  %v917_v16 = vpop.permute.xlu1 %262  ;;  %v287_v35 = vsel %vm281_vm15, %v752_v39, %v187_v61 }
 0x117   :  { %v362_v17 = vpop.permute.xlu0 %361 }
 0x118   :  { %v365_v18 = vsel %vm185_vm12, %v360_v3, %v362_v17  ;;  %v366_v44 = vsel %vm185_vm12, %v362_v17, %v364_v12  ;;  %v267_v3 = vsel %vm266_vm5, %v261_v11, %v917_v16 }
 0x119   :  { %v455_v19 = vsel %vm281_vm15, %v736_v32, %v365_v18  ;;  %v922_v20 = vpop.permute.xlu1 %438  ;;  %v458_v48 = vsel %vm281_vm15, %v785_v52, %v366_v44  ;;  %v485_v44 = vld [vmem:[%s1007_s1] sm:$0x3] }
 0x11b   :  { %v924_v21 = vpop.permute.xlu0 %264 }
 0x11c   :  { %v268_v18 = vsel %vm266_vm5, %v917_v16, %v924_v21 }
 0x11d   :  { %v378_v22 = vpop.permute.xlu1 %377 }
 0x11f   :  { %v926_v23 = vpop.permute.xlu0 %436 }
 0x121   :  { %v374_v24 = vpop.permute.xlu1 %373 }
 0x123   :  { %v928_v25 = vpop.permute.xlu0 %272 }
 0x125   :  { %v392_v31 = vpop.permute.xlu1 %391 }
 0x127   :  { %v199_v26 = vpop.permute.xlu0 %198 }
 0x129   :  { %v388_v27 = vpop.permute.xlu1 %387 }
 0x12b   :  { %v195_v29 = vpop.permute.xlu0 %194 }
 0x12d   :  { %v238_v30 = vpop.permute.xlu1 %237 }
 0x12f   :  { %v214_v33 = vpop.permute.xlu0 %213 }
 0x131   :  { %v414_v34 = vpop.permute.xlu1 %413 }
 0x133   :  { %v210_v37 = vpop.permute.xlu0 %209 }
 0x135   :  { %v234_v38 = vpop.permute.xlu1 %233 }
 0x137   :  { %v249_v32 = vpop.permute.xlu0 %248 }
 0x139   :  { %v253_v41 = vpop.permute.xlu1 %252 }
 0x13b   :  { %v376_v42 = vpop.permute.xlu0 %375 }
 0x13c   :  { %v379_v45 = vsel %vm200_vm0, %v374_v24, %v376_v42  ;;  %v380_v46 = vsel %vm200_vm0, %v376_v42, %v378_v22 }
 0x13d   :  { %v410_v47 = vpop.permute.xlu1 %409  ;;  %v462_v54 = vsel %vm288_vm2, %v458_v48, %v380_v46  ;;  %v460_v53 = vsel %vm288_vm2, %v455_v19, %v379_v45  ;;  %v440_v19 = vsel %vm266_vm5, %v906_v8, %v926_v23  ;;  %v441_v8 = vsel %vm266_vm5, %v926_v23, %v922_v20 }
 0x13f   :  { %v390_v49 = vpop.permute.xlu0 %389 }
 0x140   :  { %v393_v50 = vsel %vm215_vm1, %v388_v27, %v390_v49  ;;  %v394_v51 = vsel %vm215_vm1, %v390_v49, %v392_v31 }
 0x141   :  { %v428_v55 = vpop.permute.xlu1 %427  ;;  %v467_v56 = vsel %vm293_vm3, %v462_v54, %v394_v51  ;;  %v464_v57 = vsel %vm293_vm3, %v460_v53, %v393_v50 }
 0x142   :  { %543 = vmatprep.subr.bf16.mxu1 %v467_v56 }
 0x143   :  { %v236_v58 = vpop.permute.xlu0 %235  ;;  %544 = vmatpush1.bf16.msra.mxu1 %v464_v57 }
 0x144   :  { %v240_v62 = vsel %vm239_vm4, %v234_v38, %v236_v58  ;;  %v241_v63 = vsel %vm239_vm4, %v236_v58, %v238_v30 }
 0x145   :  { %v424_v59 = vpop.permute.xlu1 %423  ;;  %v302_v4 = vsel %vm281_vm15, %v902_v60, %v240_v62  ;;  %v305_v5 = vsel %vm281_vm15, %v904_v28, %v241_v63 }
 0x147   :  { %v412_v52 = vpop.permute.xlu0 %411 }
 0x148   :  { %v415_v6 = vsel %vm239_vm4, %v410_v47, %v412_v52  ;;  %v416_v10 = vsel %vm239_vm4, %v412_v52, %v414_v34 }
 0x149   :  { %v197_v0 = vpop.permute.xlu1 %196  ;;  %v471_v31 = vsel %vm281_vm15, %v908_v9, %v415_v6 }
 0x14a   :  { %v201_v1 = vsel %vm200_vm0, %v195_v29, %v197_v0  ;;  %v202_v2 = vsel %vm200_vm0, %v197_v0, %v199_v26  ;;  %v474_v26 = vsel %vm281_vm15, %v910_v40, %v416_v10 }
 0x14b   :  { %v251_v36 = vpop.permute.xlu0 %250  ;;  %v292_v39 = vsel %vm288_vm2, %v287_v35, %v202_v2  ;;  %v290_v11 = vsel %vm288_vm2, %v915_v15, %v201_v1 }
 0x14c   :  { %v255_v7 = vsel %vm254_vm6, %v249_v32, %v251_v36  ;;  %v256_v43 = vsel %vm254_vm6, %v251_v36, %v253_v41 }
 0x14d   :  { %v212_v12 = vpop.permute.xlu1 %211  ;;  %v307_v60 = vsel %vm288_vm2, %v302_v4, %v255_v7  ;;  %v309_v14 = vsel %vm288_vm2, %v305_v5, %v256_v43 }
 0x14e   :  { %v216_v13 = vsel %vm215_vm1, %v210_v37, %v212_v12  ;;  %v217_v28 = vsel %vm215_vm1, %v212_v12, %v214_v33  ;;  %v311_v17 = vsel %vm293_vm3, %v307_v60, %v267_v3  ;;  %v314_v21 = vsel %vm293_vm3, %v309_v14, %v268_v18 }
 0x14f   :  { %v426_v22 = vpop.permute.xlu0 %425  ;;  %v298_v15 = vsel %vm293_vm3, %v292_v39, %v217_v28  ;;  %v295_v24 = vsel %vm293_vm3, %v290_v11, %v216_v13 }
 0x150   :  { %v429_v27 = vsel %vm254_vm6, %v424_v59, %v426_v22  ;;  %v430_v29 = vsel %vm254_vm6, %v426_v22, %v428_v55  ;;  %502 = vmatprep.subr.bf16.mxu0 %v298_v15 }
 0x151   :  { %503 = vmatpush1.bf16.msra.mxu0 %v295_v24  ;;  %v275_v16 = vpop.permute.xlu1 %274  ;;  %v478_v30 = vsel %vm288_vm2, %v474_v26, %v430_v29  ;;  %v476_v9 = vsel %vm288_vm2, %v471_v31, %v429_v27 }
 0x152   :  { %504 = vmatprep.subr.bf16.mxu0 %v314_v21  ;;  %v483_v40 = vsel %vm293_vm3, %v478_v30, %v441_v8  ;;  %v480_v33 = vsel %vm293_vm3, %v476_v9, %v440_v19  ;;  %v279_v20 = vsel %vm278_vm7, %v928_v25, %v275_v16 }
 0x153   :  { %v277_v34 = vpop.permute.xlu0 %276  ;;  %545 = vmatprep.subr.bf16.mxu1 %v483_v40  ;;  %v491_v41 = vsel %vm281_vm15, %v279_v20, 0 }
 0x154   :  { %v280_v37 = vsel %vm278_vm7, %v275_v16, %v277_v34  ;;  %546 = vmatpush1.bf16.msra.mxu1 %v480_v33 }
 0x155   :  { %505 = vmatpush1.bf16.msra.mxu0 %v311_v17  ;;  %v446_v23 = vpop.permute.xlu1 %445 }
 0x156   :  { %604 = vmatprep.subr.msk.bf16.mxu0 %vm281_vm15, %v280_v37 }
 0x157   :  { %v448_v38 = vpop.permute.xlu0 %447 }
 0x158   :  { %v451_v32 = vsel %vm278_vm7, %v446_v23, %v448_v38 }
 0x159   :  { %507 = vmatpush1.bf16.msra.mxu0 %v491_v41  ;;  %v450_v42 = vpop.permute.xlu1 %449  ;;  %v497_v25 = vsel %vm281_vm15, %v451_v32, 0 }
 0x15a   :  { %v452_v45 = vsel %vm278_vm7, %v448_v38, %v450_v42 }
 0x15b   :  { %606 = vmatprep.subr.msk.bf16.mxu1 %vm281_vm15, %v452_v45 }
 0x15c   :  { %605 = vmatmul.mubr.msk.bf16.vlgmr.msra.gmra.mrb[0].mxu0 %vm486_vm8, %v485_v44  ;;  %548 = vmatpush1.bf16.msra.mxu1 %v497_v25 }
 0x15f   :  { %607 = vmatmul.mubr.msk.bf16.vlgmr.msra.gmra.mrb[0].mxu1 %vm486_vm8, %v485_v44 }
 0x22f   :  { %v536_v46 = vpop.f32.mrb[0].mxu0 }
 0x230   :  { %629 = vtanh.f32 %v536_v46  ;;  %v538_v47 = vpop.f32.mrb[1].mxu0 }
 0x231   :  { %631 = vtanh.f32 %v538_v47  ;;  %v540_v48 = vpop.f32.mrb[2].mxu0 }
 0x232   :  { %v541_v49 = vpop.f32.mrb[3].mxu0  ;;  %v577_v50 = vpop.f32.mrb[0].mxu1 }
 0x233   :  { %633 = vtanh.f32 %v577_v50  ;;  %v579_v51 = vpop.f32.mrb[1].mxu1 }
 0x234   :  { %635 = vtanh.f32 %v579_v51  ;;  %v581_v54 = vpop.f32.mrb[2].mxu1 }
 0x235   :  { %v582_v53 = vpop.f32.mrb[3].mxu1 }
 0x23a   :  { %v630_v55 = vpop.eup %629 }
 0x23b   :  { %v632_v56 = vpop.eup %631 }
 0x23c   :  { %v590_v57 = vcombine.low %v630_v55, %v632_v56 }
 0x23d   :  { %v634_v58 = vpop.eup %633 }
 0x23e   :  { %v636_v59 = vpop.eup %635  ;;  %592 = vst [vmem:[%s1008_s2] sm:$0x77] %v590_v57 }
 0x23f   :  { %v595_v52 = vcombine.low %v634_v58, %v636_v59 }
 0x241   :  { %608 = vst [vmem:[%s1008_s2 + $0x8] sm:$0x77] %v595_v52 }
 0x242   :  { %603 = vsyncpa [#allocation3], 1 }

</bundles_post_ra>
